<compile_context>
chip_gen: v7x
topology: tpu7x:2x2x1
jax: 0.10.0
libtpu: 0.0.40
codegen_flags: <defaults>
</compile_context>

<pallas_src>
import numpy as np
import jax
import jax.numpy as jnp
from jax.experimental import pallas as pl
from jax.experimental.pallas import tpu as pltpu


def _expansion_mats(H, M):
    """Constant 0/1 matrices such that had[h*M+m, :] = x0[h, :] * xi[m, :]."""
    e_rep = np.kron(np.eye(H, dtype=np.float32), np.ones((M, 1), np.float32))  # (H*M, H)
    e_til = np.kron(np.ones((H, 1), np.float32), np.eye(M, dtype=np.float32))  # (H*M, M)
    return jnp.asarray(e_rep), jnp.asarray(e_til)


def make_fused_cin_kernel(units):
    n = len(units)

    def kernel(*refs):
        # ref order: x0, e_rep[n], e_til[n], W[n], b[n], pool_sel, fc_w_t, fc_b, out
        x0_ref = refs[0]
        e_rep_refs = refs[1:1 + n]
        e_til_refs = refs[1 + n:1 + 2 * n]
        w_refs = refs[1 + 2 * n:1 + 3 * n]
        b_refs = refs[1 + 3 * n:1 + 4 * n]
        psel_ref = refs[1 + 4 * n]          # (TB*D, TB) segment-sum selector
        fcw_ref = refs[2 + 4 * n]           # (O, F)  fc weight, transposed
        fcb_ref = refs[3 + 4 * n]           # (O, 1)
        out_ref = refs[4 + 4 * n]           # (O, TB)

        x0 = x0_ref[...]                    # (H, TB*D)
        xi = x0
        pool_sel = psel_ref[...]

        acc = None
        off = 0
        for i, U in enumerate(units):
            # Hadamard expansion via constant one-hot matmuls (no in-kernel reshape).
            x0_rep = jnp.dot(e_rep_refs[i][...], x0,
                             preferred_element_type=jnp.float32)             # (H*M, L)
            xi_til = jnp.dot(e_til_refs[i][...], xi,
                             preferred_element_type=jnp.float32)             # (H*M, L)
            had = x0_rep * xi_til                                            # (H*M, L)
            # One (U, H*M) @ (H*M, B*D) matmul per layer for the whole batch tile;
            # Conv1d(kernel_size=1) bias added once after the matmul.
            xi = jnp.dot(w_refs[i][...], had,
                         preferred_element_type=jnp.float32) + b_refs[i][...]  # (U, L)
            # sum-over-D pooling per batch column + this layer's FC contribution.
            pool = jnp.dot(xi, pool_sel, preferred_element_type=jnp.float32)   # (U, TB)
            contrib = jnp.dot(fcw_ref[:, off:off + U], pool,
                              preferred_element_type=jnp.float32)              # (O, TB)
            acc = contrib if acc is None else acc + contrib
            off += U
        out_ref[...] = (acc + fcb_ref[...]).astype(out_ref.dtype)

    return kernel


def cin_forward(feature_emb_list, params, batch_tile=None):
    X_0 = jnp.stack(feature_emb_list, axis=1)                # (B, H, D)
    B, H, D = X_0.shape
    Ws = [W for (W, _) in params["cin"]]
    bs = [b for (_, b) in params["cin"]]
    units = [W.shape[0] for W in Ws]
    fc_w, fc_b = params["fc"]                                # (F, O), (O,)
    F, O = fc_w.shape
    assert F == sum(units)

    TB = B if batch_tile is None else batch_tile
    assert B % TB == 0
    assert TB == B or (TB * D) % 128 == 0, "partial batch tiles must be lane-aligned"
    n_tiles = B // TB
    n = len(units)

    # Layout plumbing (host side): fold the batch into the lane axis -> (H, B*D).
    x0_t = jnp.transpose(X_0, (1, 0, 2)).reshape(H, B * D)

    # Host-built constant matrices.
    e_reps, e_tils = [], []
    M = H
    for U in units:
        er, et = _expansion_mats(H, M)
        e_reps.append(er)
        e_tils.append(et)
        M = U
    pool_sel = jnp.asarray(np.kron(np.eye(TB, dtype=np.float32),
                                   np.ones((D, 1), np.float32)))            # (TB*D, TB)
    fc_w_t = fc_w.T                                                         # (O, F)
    fc_b_c = fc_b.reshape(O, 1)
    b_cols = [b.reshape(-1, 1) for b in bs]

    kernel = make_fused_cin_kernel(units)

    def full(shape):
        return pl.BlockSpec(shape, lambda t: (0, 0))

    in_specs = [pl.BlockSpec((H, TB * D), lambda t: (0, t))]
    in_specs += [full(a.shape) for a in e_reps]
    in_specs += [full(a.shape) for a in e_tils]
    in_specs += [full(W.shape) for W in Ws]
    in_specs += [full(bc.shape) for bc in b_cols]
    in_specs += [full(pool_sel.shape), full(fc_w_t.shape), full(fc_b_c.shape)]

    out_t = pl.pallas_call(
        kernel,
        out_shape=jax.ShapeDtypeStruct((O, B), jnp.float32),
        grid=(n_tiles,),
        in_specs=in_specs,
        out_specs=pl.BlockSpec((O, TB), lambda t: (0, t)),
        compiler_params=pltpu.CompilerParams(dimension_semantics=("parallel",)),
    )(x0_t, *e_reps, *e_tils, *Ws, *b_cols, pool_sel, fc_w_t, fc_b_c)

    return out_t.T                                                          # (B, O)


def cin_reference(feature_emb_list, params):
    """Pure-JAX mirror of the PyTorch forward for correctness checking."""
    X_0 = jnp.stack(feature_emb_list, axis=1)
    B, H, D = X_0.shape
    X_i = X_0
    pooled = []
    for (W, b) in params["cin"]:
        had = jnp.einsum('bhd,bmd->bhmd', X_0, X_i).reshape(B, -1, D)
        X_i = jnp.einsum('uc,bcd->bud', W, had) + b[None, :, None]
        pooled.append(X_i.sum(-1))
    concat = jnp.concatenate(pooled, axis=-1)
    fc_w, fc_b = params["fc"]
    return concat @ fc_w + fc_b[None, :]


if __name__ == "__main__":
    B, num_fields, D = 2, 4, 32
    cin_layer_units = [8, 4]
    output_dim = 1

    key = jax.random.PRNGKey(0)
    n_keys = num_fields + 2 * len(cin_layer_units) + 2
    keys = jax.random.split(key, n_keys)

    feature_emb_list = [jax.random.normal(keys[i], (B, D), jnp.float32)
                        for i in range(num_fields)]

    # Deterministic synthetic parameters (Conv1d kernel_size=1 weights as 2-D mats).
    params = {"cin": [], "fc": None}
    k = num_fields
    prev = num_fields
    for i, unit in enumerate(cin_layer_units):
        in_ch = num_fields * prev            # num_fields**2 for i==0
        W = jax.random.normal(keys[k], (unit, in_ch), jnp.float32) * 0.1; k += 1
        b = jax.random.normal(keys[k], (unit,), jnp.float32) * 0.1; k += 1
        params["cin"].append((W, b))
        prev = unit
    F = sum(cin_layer_units)
    fc_w = jax.random.normal(keys[k], (F, output_dim), jnp.float32) * 0.1; k += 1
    fc_b = jax.random.normal(keys[k], (output_dim,), jnp.float32) * 0.1
    params["fc"] = (fc_w, fc_b)

    out = cin_forward(feature_emb_list, params)
    out = jax.block_until_ready(out)

    ref = cin_reference(feature_emb_list, params)
    np.testing.assert_allclose(np.asarray(out), np.asarray(ref),
                               rtol=1e-5, atol=1e-5)
    print("KERNEL_OK")
</pallas_src>

<mosaic_0001>
module attributes {stable_mosaic.version = 11 : i64} {
  func.func @kernel(%arg0: i32, %arg1: memref<4x64xf32, #tpu.memory_space<vmem>>, %arg2: memref<16x4xf32, #tpu.memory_space<vmem>>, %arg3: memref<32x4xf32, #tpu.memory_space<vmem>>, %arg4: memref<16x4xf32, #tpu.memory_space<vmem>>, %arg5: memref<32x8xf32, #tpu.memory_space<vmem>>, %arg6: memref<8x16xf32, #tpu.memory_space<vmem>>, %arg7: memref<4x32xf32, #tpu.memory_space<vmem>>, %arg8: memref<8x1xf32, #tpu.memory_space<vmem>>, %arg9: memref<4x1xf32, #tpu.memory_space<vmem>>, %arg10: memref<64x2xf32, #tpu.memory_space<vmem>>, %arg11: memref<1x12xf32, #tpu.memory_space<vmem>>, %arg12: memref<1x1xf32, #tpu.memory_space<vmem>>, %arg13: memref<1x2xf32, #tpu.memory_space<vmem>>) attributes {dimension_semantics = [#tpu.dimension_semantics<parallel>], iteration_bounds = array<i64: 1>, scalar_prefetch = 0 : i64, scratch_operands = 0 : i64, tpu.core_type = #tpu.core_type<tc>, window_params = [{transform_indices = @transform_0, window_bounds = array<i64: 4, 64>}, {pipeline_mode = #tpu.pipeline_mode<synchronous>, transform_indices = @transform_1, window_bounds = array<i64: 16, 4>}, {pipeline_mode = #tpu.pipeline_mode<synchronous>, transform_indices = @transform_2, window_bounds = array<i64: 32, 4>}, {pipeline_mode = #tpu.pipeline_mode<synchronous>, transform_indices = @transform_3, window_bounds = array<i64: 16, 4>}, {pipeline_mode = #tpu.pipeline_mode<synchronous>, transform_indices = @transform_4, window_bounds = array<i64: 32, 8>}, {pipeline_mode = #tpu.pipeline_mode<synchronous>, transform_indices = @transform_5, window_bounds = array<i64: 8, 16>}, {pipeline_mode = #tpu.pipeline_mode<synchronous>, transform_indices = @transform_6, window_bounds = array<i64: 4, 32>}, {pipeline_mode = #tpu.pipeline_mode<synchronous>, transform_indices = @transform_7, window_bounds = array<i64: 8, 1>}, {pipeline_mode = #tpu.pipeline_mode<synchronous>, transform_indices = @transform_8, window_bounds = array<i64: 4, 1>}, {pipeline_mode = #tpu.pipeline_mode<synchronous>, transform_indices = @transform_9, window_bounds = array<i64: 64, 2>}, {pipeline_mode = #tpu.pipeline_mode<synchronous>, transform_indices = @transform_10, window_bounds = array<i64: 1, 12>}, {pipeline_mode = #tpu.pipeline_mode<synchronous>, transform_indices = @transform_11, window_bounds = array<i64: 1, 1>}, {transform_indices = @transform_12, window_bounds = array<i64: 1, 2>}]} {
    %c0 = arith.constant 0 : index
    %c0_0 = arith.constant 0 : index
    %0 = vector.load %arg1[%c0, %c0_0] : memref<4x64xf32, #tpu.memory_space<vmem>>, vector<4x64xf32>
    %c0_1 = arith.constant 0 : index
    %c0_2 = arith.constant 0 : index
    %1 = vector.load %arg10[%c0_1, %c0_2] : memref<64x2xf32, #tpu.memory_space<vmem>>, vector<64x2xf32>
    %c0_3 = arith.constant 0 : index
    %c0_4 = arith.constant 0 : index
    %2 = vector.load %arg2[%c0_3, %c0_4] : memref<16x4xf32, #tpu.memory_space<vmem>>, vector<16x4xf32>
    %cst = arith.constant dense<0.000000e+00> : vector<16x64xf32>
    %3 = tpu.matmul %2, %0, %cst {dimension_numbers = #tpu.dot_dimension_numbers<[1], [0], [0], [1], [0, 0, 1, 1], [], []>} : vector<16x4xf32>, vector<4x64xf32>, vector<16x64xf32> -> vector<16x64xf32>
    %c0_5 = arith.constant 0 : index
    %c0_6 = arith.constant 0 : index
    %4 = vector.load %arg4[%c0_5, %c0_6] : memref<16x4xf32, #tpu.memory_space<vmem>>, vector<16x4xf32>
    %cst_7 = arith.constant dense<0.000000e+00> : vector<16x64xf32>
    %5 = tpu.matmul %4, %0, %cst_7 {dimension_numbers = #tpu.dot_dimension_numbers<[1], [0], [0], [1], [0, 0, 1, 1], [], []>} : vector<16x4xf32>, vector<4x64xf32>, vector<16x64xf32> -> vector<16x64xf32>
    %6 = arith.mulf %3, %5 : vector<16x64xf32>
    %c0_8 = arith.constant 0 : index
    %c0_9 = arith.constant 0 : index
    %7 = vector.load %arg6[%c0_8, %c0_9] : memref<8x16xf32, #tpu.memory_space<vmem>>, vector<8x16xf32>
    %cst_10 = arith.constant dense<0.000000e+00> : vector<8x64xf32>
    %8 = tpu.matmul %7, %6, %cst_10 {dimension_numbers = #tpu.dot_dimension_numbers<[1], [0], [0], [1], [0, 0, 1, 1], [], []>} : vector<8x16xf32>, vector<16x64xf32>, vector<8x64xf32> -> vector<8x64xf32>
    %c0_11 = arith.constant 0 : index
    %c0_12 = arith.constant 0 : index
    %9 = vector.load %arg8[%c0_11, %c0_12] : memref<8x1xf32, #tpu.memory_space<vmem>>, vector<8x1xf32>
    %10 = vector.broadcast %9 : vector<8x1xf32> to vector<8x64xf32>
    %11 = arith.addf %8, %10 : vector<8x64xf32>
    %cst_13 = arith.constant dense<0.000000e+00> : vector<8x2xf32>
    %12 = tpu.matmul %11, %1, %cst_13 {dimension_numbers = #tpu.dot_dimension_numbers<[1], [0], [0], [1], [0, 0, 1, 1], [], []>} : vector<8x64xf32>, vector<64x2xf32>, vector<8x2xf32> -> vector<8x2xf32>
    %c0_14 = arith.constant 0 : index
    %c0_15 = arith.constant 0 : index
    %13 = vector.load %arg11[%c0_14, %c0_15] : memref<1x12xf32, #tpu.memory_space<vmem>>, vector<1x8xf32>
    %cst_16 = arith.constant dense<0.000000e+00> : vector<1x2xf32>
    %14 = tpu.matmul %13, %12, %cst_16 {dimension_numbers = #tpu.dot_dimension_numbers<[1], [0], [0], [1], [0, 0, 1, 1], [], []>} : vector<1x8xf32>, vector<8x2xf32>, vector<1x2xf32> -> vector<1x2xf32>
    %c0_17 = arith.constant 0 : index
    %c0_18 = arith.constant 0 : index
    %15 = vector.load %arg3[%c0_17, %c0_18] : memref<32x4xf32, #tpu.memory_space<vmem>>, vector<32x4xf32>
    %cst_19 = arith.constant dense<0.000000e+00> : vector<32x64xf32>
    %16 = tpu.matmul %15, %0, %cst_19 {dimension_numbers = #tpu.dot_dimension_numbers<[1], [0], [0], [1], [0, 0, 1, 1], [], []>} : vector<32x4xf32>, vector<4x64xf32>, vector<32x64xf32> -> vector<32x64xf32>
    %c0_20 = arith.constant 0 : index
    %c0_21 = arith.constant 0 : index
    %17 = vector.load %arg5[%c0_20, %c0_21] : memref<32x8xf32, #tpu.memory_space<vmem>>, vector<32x8xf32>
    %cst_22 = arith.constant dense<0.000000e+00> : vector<32x64xf32>
    %18 = tpu.matmul %17, %11, %cst_22 {dimension_numbers = #tpu.dot_dimension_numbers<[1], [0], [0], [1], [0, 0, 1, 1], [], []>} : vector<32x8xf32>, vector<8x64xf32>, vector<32x64xf32> -> vector<32x64xf32>
    %19 = arith.mulf %16, %18 : vector<32x64xf32>
    %c0_23 = arith.constant 0 : index
    %c0_24 = arith.constant 0 : index
    %20 = vector.load %arg7[%c0_23, %c0_24] : memref<4x32xf32, #tpu.memory_space<vmem>>, vector<4x32xf32>
    %cst_25 = arith.constant dense<0.000000e+00> : vector<4x64xf32>
    %21 = tpu.matmul %20, %19, %cst_25 {dimension_numbers = #tpu.dot_dimension_numbers<[1], [0], [0], [1], [0, 0, 1, 1], [], []>} : vector<4x32xf32>, vector<32x64xf32>, vector<4x64xf32> -> vector<4x64xf32>
    %c0_26 = arith.constant 0 : index
    %c0_27 = arith.constant 0 : index
    %22 = vector.load %arg9[%c0_26, %c0_27] : memref<4x1xf32, #tpu.memory_space<vmem>>, vector<4x1xf32>
    %23 = vector.broadcast %22 : vector<4x1xf32> to vector<4x64xf32>
    %24 = arith.addf %21, %23 : vector<4x64xf32>
    %cst_28 = arith.constant dense<0.000000e+00> : vector<4x2xf32>
    %25 = tpu.matmul %24, %1, %cst_28 {dimension_numbers = #tpu.dot_dimension_numbers<[1], [0], [0], [1], [0, 0, 1, 1], [], []>} : vector<4x64xf32>, vector<64x2xf32>, vector<4x2xf32> -> vector<4x2xf32>
    %c0_29 = arith.constant 0 : index
    %c8 = arith.constant 8 : index
    %26 = vector.load %arg11[%c0_29, %c8] : memref<1x12xf32, #tpu.memory_space<vmem>>, vector<1x4xf32>
    %cst_30 = arith.constant dense<0.000000e+00> : vector<1x2xf32>
    %27 = tpu.matmul %26, %25, %cst_30 {dimension_numbers = #tpu.dot_dimension_numbers<[1], [0], [0], [1], [0, 0, 1, 1], [], []>} : vector<1x4xf32>, vector<4x2xf32>, vector<1x2xf32> -> vector<1x2xf32>
    %28 = arith.addf %14, %27 : vector<1x2xf32>
    %c0_31 = arith.constant 0 : index
    %c0_32 = arith.constant 0 : index
    %29 = vector.load %arg12[%c0_31, %c0_32] : memref<1x1xf32, #tpu.memory_space<vmem>>, vector<1x1xf32>
    %30 = vector.broadcast %29 : vector<1x1xf32> to vector<1x2xf32>
    %31 = arith.addf %28, %30 : vector<1x2xf32>
    %c0_33 = arith.constant 0 : index
    %c0_34 = arith.constant 0 : index
    %32 = vector.load %arg13[%c0_33, %c0_34] : memref<1x2xf32, #tpu.memory_space<vmem>>, vector<1x2xf32>
    tpu.vector_store %arg13[%c0_33, %c0_34], %31 {strides = array<i32>} : memref<1x2xf32, #tpu.memory_space<vmem>>, vector<1x2xf32>,
    return
  }
  func.func @transform_0(%arg0: i32) -> (i32, i32) {
    %c0_i32 = arith.constant 0 : i32
    %c0_i32_0 = arith.constant 0 : i32
    return %c0_i32, %arg0 : i32, i32
  }
  func.func @transform_1(%arg0: i32) -> (i32, i32) {
    %c0_i32 = arith.constant 0 : i32
    %c0_i32_0 = arith.constant 0 : i32
    %c0_i32_1 = arith.constant 0 : i32
    return %c0_i32, %c0_i32_0 : i32, i32
  }
  func.func @transform_2(%arg0: i32) -> (i32, i32) {
    %c0_i32 = arith.constant 0 : i32
    %c0_i32_0 = arith.constant 0 : i32
    %c0_i32_1 = arith.constant 0 : i32
    return %c0_i32, %c0_i32_0 : i32, i32
  }
  func.func @transform_3(%arg0: i32) -> (i32, i32) {
    %c0_i32 = arith.constant 0 : i32
    %c0_i32_0 = arith.constant 0 : i32
    %c0_i32_1 = arith.constant 0 : i32
    return %c0_i32, %c0_i32_0 : i32, i32
  }
  func.func @transform_4(%arg0: i32) -> (i32, i32) {
    %c0_i32 = arith.constant 0 : i32
    %c0_i32_0 = arith.constant 0 : i32
    %c0_i32_1 = arith.constant 0 : i32
    return %c0_i32, %c0_i32_0 : i32, i32
  }
  func.func @transform_5(%arg0: i32) -> (i32, i32) {
    %c0_i32 = arith.constant 0 : i32
    %c0_i32_0 = arith.constant 0 : i32
    %c0_i32_1 = arith.constant 0 : i32
    return %c0_i32, %c0_i32_0 : i32, i32
  }
  func.func @transform_6(%arg0: i32) -> (i32, i32) {
    %c0_i32 = arith.constant 0 : i32
    %c0_i32_0 = arith.constant 0 : i32
    %c0_i32_1 = arith.constant 0 : i32
    return %c0_i32, %c0_i32_0 : i32, i32
  }
  func.func @transform_7(%arg0: i32) -> (i32, i32) {
    %c0_i32 = arith.constant 0 : i32
    %c0_i32_0 = arith.constant 0 : i32
    %c0_i32_1 = arith.constant 0 : i32
    return %c0_i32, %c0_i32_0 : i32, i32
  }
  func.func @transform_8(%arg0: i32) -> (i32, i32) {
    %c0_i32 = arith.constant 0 : i32
    %c0_i32_0 = arith.constant 0 : i32
    %c0_i32_1 = arith.constant 0 : i32
    return %c0_i32, %c0_i32_0 : i32, i32
  }
  func.func @transform_9(%arg0: i32) -> (i32, i32) {
    %c0_i32 = arith.constant 0 : i32
    %c0_i32_0 = arith.constant 0 : i32
    %c0_i32_1 = arith.constant 0 : i32
    return %c0_i32, %c0_i32_0 : i32, i32
  }
  func.func @transform_10(%arg0: i32) -> (i32, i32) {
    %c0_i32 = arith.constant 0 : i32
    %c0_i32_0 = arith.constant 0 : i32
    %c0_i32_1 = arith.constant 0 : i32
    return %c0_i32, %c0_i32_0 : i32, i32
  }
  func.func @transform_11(%arg0: i32) -> (i32, i32) {
    %c0_i32 = arith.constant 0 : i32
    %c0_i32_0 = arith.constant 0 : i32
    %c0_i32_1 = arith.constant 0 : i32
    return %c0_i32, %c0_i32_0 : i32, i32
  }
  func.func @transform_12(%arg0: i32) -> (i32, i32) {
    %c0_i32 = arith.constant 0 : i32
    %c0_i32_0 = arith.constant 0 : i32
    return %c0_i32, %arg0 : i32, i32
  }
}

</mosaic_0001>

<bundles_post_ra>
// kernel: tpu_custom_call.1
= control target key start
LH: loop header
LB: loop body
LE: loop exit
PB: predicated region body
PF: predicated region fallthrough
CT: control target
= control target key end

     0   :  { %s1361_s0 = inlined_call_operand.vmem [shape: f32[4,64], index: 0, kind: input, shape index: {}]   ;;  %s1362_s1 = inlined_call_operand.vmem [shape: f32[16,4], index: 1, kind: input, shape index: {}]   ;;  %s1363_s2 = inlined_call_operand.vmem [shape: f32[32,4], index: 2, kind: input, shape index: {}]   ;;  %s1364_s3 = inlined_call_operand.vmem [shape: f32[16,4], index: 3, kind: input, shape index: {}]   ;;  %s1365_s4 = inlined_call_operand.vmem [shape: f32[32,8], index: 4, kind: input, shape index: {}]   ;;  %s1366_s5 = inlined_call_operand.vmem [shape: f32[8,16], index: 5, kind: input, shape index: {}]   ;;  %s1367_s6 = inlined_call_operand.vmem [shape: f32[4,32], index: 6, kind: input, shape index: {}]   ;;  %s1368_s7 = inlined_call_operand.vmem [shape: f32[8,1], index: 7, kind: input, shape index: {}]   ;;  %s1369_s8 = inlined_call_operand.vmem [shape: f32[4,1], index: 8, kind: input, shape index: {}]   ;;  %s1370_s9 = inlined_call_operand.vmem [shape: f32[64,2], index: 9, kind: input, shape index: {}]   ;;  %s1371_s10 = inlined_call_operand.vmem [shape: f32[1,12], index: 10, kind: input, shape index: {}]   ;;  %s1372_s11 = inlined_call_operand.<no memory space> [shape: f32[1,1], index: 11, kind: input, shape index: {}]   ;;  %s1373_s12 = inlined_call_operand.hbm [shape: f32[1,2], index: 12, kind: output, shape index: {}]  }
   0x1   :  { %v17_v0 = vstv %s1372_s11 }
   0x2   :  { %18 = vst [vmem:[#allocation2] sm:$0x1] %v17_v0 }
   0x3   :  { %v44_v1 = vld [vmem:[%s1361_s0] sm:$0xf]  ;;  %vm62_vm0 = vcmask 1043456   ;;  %vm55_vm1 = vcmask 31744   ;;  %v54_v4 = vld [vmem:[%s1362_s1 + $0x8] sm:$0xff] }
   0x4   :  { %v53_v2 = vld [vmem:[%s1362_s1] sm:$0xff]  ;;  %992 = vmatprep.subr.msk.mxu0 %vm62_vm0, %v44_v1  ;;  %997 = vmatprep.subr.msk.mxu1 %vm62_vm0, %v44_v1  ;;  %v142_v5 = vld [vmem:[%s1364_s3 + $0x8] sm:$0xff] }
   0x5   :  { %v141_v3 = vld [vmem:[%s1364_s3] sm:$0xff] }
   0x6   :  { %19 = vsyncpa [#allocation4], 0  ;;  %993 = vmatpush3.msk.msra.mxu0 %vm62_vm0, %v44_v1  ;;  %994 = vmatprep.mubr.msk.f32.mxu0 %vm55_vm1, %v53_v2  ;;  %v1149_v6 = vmov 0.0|0.0   ;;  %vm1150_vm2 = vmmov 0   ;;  %v1151_v7 = vmov 0.0   ;;  %v227_v8 = vld [vmem:[%s1368_s7] sm:$0xff]  ;;  %v744_v60 = vlaneseq }
   0x7   :  { %998 = vmatpush3.msk.msra.mxu1 %vm62_vm0, %v44_v1  ;;  %999 = vmatprep.mubr.msk.f32.mxu1 %vm55_vm1, %v141_v3  ;;  %v45_v9 = vld [vmem:[%s1370_s9] sm:$0xff]  ;;  %v1152_v10 = vmov 0   ;;  %v46_v11 = vld [vmem:[%s1370_s9 + $0x8] sm:$0xff]  ;;  %v47_v12 = vld [vmem:[%s1370_s9 + $0x10] sm:$0xff]  ;;  %vm233_vm3 = vcmask 130048   ;;  %vm487_vm4 = vcmask 64512  }
   0x8   :  { %995 = vmatmul.mubr.msk.f32.vlgmr.msra.gmra.mrb[0].mxu0 %vm55_vm1, %v54_v4  ;;  %1000 = vmatmul.mubr.msk.f32.vlgmr.msra.gmra.mrb[0].mxu1 %vm55_vm1, %v142_v5  ;;  %v48_v13 = vld [vmem:[%s1370_s9 + $0x18] sm:$0xff]  ;;  %v1088_v14 = vpack.c.bf16 %v46_v11, %v45_v9  ;;  %v590_v15 = vld [vmem:[%s1369_s8] sm:$0xf]  ;;  %v50_v18 = vld [vmem:[%s1370_s9 + $0x28] sm:$0xff]  ;;  %vm307_vm5 = vcmask 523264   ;;  %vm596_vm6 = vcmask 261120  }
   0x9   :  { %1084 = vmatprep.subr.bf16.mxu0 %v1149_v6  ;;  %1087 = vmatprep.subr.bf16.mxu1 %v1149_v6  ;;  %v1091_v16 = vpack.c.bf16 %v48_v13, %v47_v12  ;;  %v49_v17 = vld [vmem:[%s1370_s9 + $0x20] sm:$0xff]  ;;  %v383_v29 = vld [vmem:[%s1363_s2 + $0x8] sm:$0xff]  ;;  %v51_v30 = vld [vmem:[%s1370_s9 + $0x30] sm:$0xff]  ;;  %v745_v61 = vshrl.u32 %v744_v60, 7  ;;  %s1153_s24 = smov 120   ;;  %vm908_vm7 = vcmask 8192  }
   0xa   :  { %1006 = vmatprep.mubr.msk.f32.mxu0 %vm1150_vm2, %v1151_v7  ;;  %1025 = vmatprep.mubr.msk.f32.mxu1 %vm1150_vm2, %v1151_v7  ;;  %v1094_v19 = vpack.c.bf16 %v50_v18, %v49_v17  ;;  %v226_v27 = vld [vmem:[%s1366_s5] sm:$0xff]  ;;  %v52_v31 = vld [vmem:[%s1370_s9 + $0x38] sm:$0xff]  ;;  %v384_v33 = vld [vmem:[%s1363_s2 + $0x10] sm:$0xff] }
   0xb   :  { %1123 = vset.pattern.permute.xlu0 %v1152_v10  ;;  %1124 = vset.pattern.permute.xlu1 %v1152_v10  ;;  %v382_v28 = vld [vmem:[%s1363_s2] sm:$0xff]  ;;  %v1097_v32 = vpack.c.bf16 %v52_v31, %v51_v30  ;;  %v385_v34 = vld [vmem:[%s1363_s2 + $0x18] sm:$0xff]  ;;  %v484_v40 = vld [vmem:[%s1365_s4 + $0x8] sm:$0xff]  ;;  %v746_v63 = vsub.s32 0, %v745_v61 }
   0xc   :  { %230 = vperm.xlu0 %1123, %v227_v8   ;;  %1089 = vmatpush3.bf16.msra.mxu1 %v1088_v14  ;;  %v483_v35 = vld [vmem:[%s1365_s4] sm:$0xff]  ;;  %v485_v41 = vld [vmem:[%s1365_s4 + $0x10] sm:$0xff]  ;;  %v486_v44 = vld [vmem:[%s1365_s4 + $0x18] sm:$0xff] }
   0xd   :  { %1090 = vmatprep.subr.bf16.mxu1 %v1149_v6  ;;  %v589_v59 = vld [vmem:[%s1367_s6] sm:$0xf]  ;;  %s1154_s6 = smov [#allocation3]  }
   0xe   :  { %v381_v62 = vld [vmem:[%s1371_s10] sm:$0x1]  ;;  %s916_s10 = sshll.u32 %s1154_s6, 4  ;;  %s917_s10 = int_to_ptr.vmem [resolvable:$true] %s916_s10 }
   0xf   :  { %v747_v0 = vrot.slane %v381_v62, %v746_v63  ;;  %v897_v5 = vld [vmem:[#allocation2] sm:$0x1]  ;;  %s1125_s25 = scalar_lea.vmem %s917_s10, 16  ;;  %s1129_s8 = scalar_lea.vmem %s917_s10, 32 }
  0x10   :  { %593 = vperm.xlu0 %1123, %v590_v15   ;;  %1092 = vmatpush3.bf16.msra.mxu1 %v1091_v16  ;;  %p1126_p0 = scmp.ne.s32.totalorder %s917_s10, %s1125_s25  ;;  %p1130_p1 = scmp.lt.s32.totalorder %s917_s10, %s917_s10 }
  0x11   :  { %1093 = vmatprep.subr.bf16.mxu1 %v1149_v6  ;;  %748 = vrot.lane.b32.xlu1 %v747_v0, %s1153_s24  ;;  %p1131_p2 = scmp.lt.s32.totalorder %s1129_s8, %s1125_s25 }
  0x13   :  { %p1132_p3 = por %p1131_p2, %p1130_p1 }
  0x14   :  { %1095 = vmatpush3.bf16.msra.mxu1 %v1094_v19 }
  0x15   :  { %1096 = vmatprep.subr.bf16.mxu1 %v1149_v6  ;;  %900 = vperm.xlu1 %1124, %v897_v5   ;;  %p1133_p4 = pnand %p1132_p3, %p1126_p0 }
  0x18   :  { %1098 = vmatpush3.bf16.msra.mxu1 %v1097_v32 }
  0x19   :  { %1105 = vmatprep.subr.bf16.mxu1 %v1149_v6 }
  0x8b   :  { %v231_v36 = vpop.permute.xlu0 %230 }
  0xdb   :  { %v996_v20 = vpop.f32.mrb[0].mxu0  ;;  %v1001_v21 = vpop.f32.mrb[0].mxu1 }
  0xdc   :  { %v225_v22 = vmul.f32 %v1001_v21, %v996_v20  ;;  %v132_v23 = vpop.f32.mrb[1].mxu0  ;;  %v215_v24 = vpop.f32.mrb[1].mxu1 }
  0xdd   :  { %v224_v25 = vmul.f32 %v215_v24, %v132_v23 }
  0xdf   :  { %v1085_v26 = vpack.c.bf16 %v225_v22, %v224_v25 }
  0xe1   :  { %1086 = vmatpush3.bf16.msra.mxu0 %v1085_v26 }
  0xe2   :  { %1028 = vmatprep.subr.msk.mxu0 %vm62_vm0, %v44_v1 }
  0xe4   :  { %1007 = vmatmul.mubr.msk.f32.vlgmr.msra.gmra.mrb[2].mxu0 %vm233_vm3, %v226_v27 }
  0xe5   :  { %1029 = vmatpush3.msk.msra.mxu0 %vm62_vm0, %v44_v1  ;;  %1030 = vmatprep.mubr.msk.f32.mxu0 %vm55_vm1, %v382_v28  ;;  %v594_v1 = vpop.permute.xlu0 %593 }
  0xe8   :  { %1031 = vmatmul.mubr.msk.f32.vlgmr.msra.gmra.mrb[4].mxu0 %vm55_vm1, %v383_v29 }
  0xe9   :  { %1033 = vmatprep.mubr.msk.f32.mxu0 %vm55_vm1, %v384_v33 }
  0xec   :  { %1034 = vmatmul.mubr.msk.f32.gmra.mrb[6].mxu0 %vm55_vm1, %v385_v34 }
  0xed   :  { %1038 = vmatprep.mubr.msk.f32.mxu0 %vm487_vm4, %v483_v35 }
 0x1b7   :  { %v303_v37 = vpop.f32.mrb[2].mxu0 }
 0x1b8   :  { %v304_v38 = vadd.f32 %v303_v37, %v231_v36  ;;  %v1008_v39 = vpop.f32.mrb[3].mxu0 }
 0x1ba   :  { %1026 = vmatmul.mubr.msk.f32.vlgmr.msra.gmra.mrb[2].mxu1 %vm307_vm5, %v304_v38  ;;  %1036 = vmatprep.subr.mxu0 %v304_v38 }
 0x1bb   :  { %1037 = vmatpush3.msra.mxu0 %v304_v38  ;;  %v1032_v42 = vpop.f32.mrb[4].mxu0  ;;  %1107 = vmatpush3.bf16.msra.mxu1 %v1088_v14 }
 0x1bc   :  { %1039 = vmatmul.mubr.msk.f32.vlgmr.msra.gmra.mrb[8].mxu0 %vm487_vm4, %v484_v40  ;;  %v464_v43 = vpop.f32.mrb[5].mxu0  ;;  %1099 = vmatprep.subr.bf16.mxu0 %v1149_v6 }
 0x1bd   :  { %1041 = vmatprep.mubr.msk.f32.mxu0 %vm487_vm4, %v485_v41  ;;  %1108 = vmatprep.subr.bf16.mxu1 %v1149_v6 }
 0x1be   :  { %1071 = vmatprep.mubr.msk.f32.mxu1 %vm1150_vm2, %v1151_v7 }
 0x1bf   :  { %1110 = vmatpush3.bf16.msra.mxu1 %v1091_v16  ;;  %v1035_v45 = vpop.f32.mrb[6].mxu0 }
 0x1c0   :  { %1042 = vmatmul.mubr.msk.f32.gmra.mrb[10].mxu0 %vm487_vm4, %v486_v44  ;;  %1111 = vmatprep.subr.bf16.mxu1 %v1149_v6  ;;  %v474_v46 = vpop.f32.mrb[7].mxu0 }
 0x1c1   :  { %1052 = vmatprep.mubr.msk.f32.mxu0 %vm1150_vm2, %v1151_v7 }
 0x1c3   :  { %1113 = vmatpush3.bf16.msra.mxu1 %v1094_v19 }
 0x1c4   :  { %1114 = vmatprep.subr.bf16.mxu1 %v1149_v6 }
 0x1c7   :  { %1116 = vmatpush3.bf16.msra.mxu1 %v1097_v32 }
 0x28d   :  { %v377_v47 = vpop.f32.mrb[2].mxu1 }
 0x28e   :  { %v1027_v48 = vpop.f32.mrb[3].mxu1 }
 0x28f   :  { %v1040_v49 = vpop.f32.mrb[8].mxu0 }
 0x290   :  { %v586_v50 = vmul.f32 %v1040_v49, %v1032_v42  ;;  %v566_v51 = vpop.f32.mrb[9].mxu0 }
 0x291   :  { %v585_v52 = vmul.f32 %v566_v51, %v464_v43 }
 0x293   :  { %v1100_v53 = vpack.c.bf16 %v586_v50, %v585_v52  ;;  %v1043_v54 = vpop.f32.mrb[10].mxu0 }
 0x294   :  { %v588_v55 = vmul.f32 %v1043_v54, %v1035_v45  ;;  %v576_v56 = vpop.f32.mrb[11].mxu0 }
 0x295   :  { %v587_v57 = vmul.f32 %v576_v56, %v474_v46  ;;  %1101 = vmatpush3.bf16.msra.mxu0 %v1100_v53 }
 0x296   :  { %1102 = vmatprep.subr.bf16.mxu0 %v1149_v6  ;;  %v749_v6 = vpop.permute.xlu1 %748 }
 0x297   :  { %v1103_v58 = vpack.c.bf16 %v588_v55, %v587_v57 }
 0x299   :  { %1104 = vmatpush3.bf16.msra.mxu0 %v1103_v58 }
 0x29a   :  { %1074 = vmatprep.subr.mxu0 %v1151_v7  ;;  %v901_v11 = vpop.permute.xlu1 %900 }
 0x29b   :  { %v906_v13 = vrot.slane %v901_v11, %v746_v63 }
 0x29c   :  { %1053 = vmatmul.mubr.msk.f32.vlgmr.msra.gmra.mrb[12].mxu0 %vm596_vm6, %v589_v59 }
 0x29d   :  { %1076 = vmatprep.mubr.msk.f32.mxu0 %vm1150_vm2, %v1151_v7 }
 0x36f   :  { %v666_v2 = vpop.f32.mrb[12].mxu0 }
 0x370   :  { %v667_v3 = vadd.f32 %v666_v2, %v594_v1  ;;  %v1054_v4 = vpop.f32.mrb[13].mxu0 }
 0x372   :  { %1072 = vmatmul.mubr.msk.f32.vlgmr.msra.gmra.mrb[4].mxu1 %vm307_vm5, %v667_v3 }
 0x445   :  { %v739_v8 = vpop.f32.mrb[4].mxu1 }
 0x446   :  { %v1073_v9 = vpop.f32.mrb[5].mxu1  ;;  %1075 = vmatpush3.msk.msra.mxu0 %vm62_vm0, %v739_v8 }
 0x447   :  { %1079 = vmatprep.subr.mxu0 %v1151_v7  ;;  %1077 = vmatmul.mubr.msk.f32.vlgmr.msra.gmra.mrb[14].mxu0 %vm55_vm1, %v749_v6 }
 0x448   :  { %1080 = vmatpush3.msra.mxu0 %v377_v47  ;;  %1081 = vmatprep.mubr.msk.f32.mxu0 %vm1150_vm2, %v1151_v7 }
 0x44b   :  { %1082 = vmatmul.mubr.msk.f32.vlgmr.msra.gmra.mrb[16].mxu0 %vm487_vm4, %v381_v62 }
 0x51a   :  { %v821_v10 = vpop.f32.mrb[14].mxu0 }
 0x51b   :  { %v1078_v12 = vpop.f32.mrb[15].mxu0 }
 0x51e   :  { %v893_v14 = vpop.f32.mrb[16].mxu0 }
 0x51f   :  { %v894_v15 = vadd.f32 %v893_v14, %v821_v10  ;;  %v1083_v16 = vpop.f32.mrb[17].mxu0 }
 0x521   :  { %v907_v17 = vadd.f32 %v906_v13, %v894_v15 }
 0x523   :  { %909 = vst.msk [vmem:[#allocation3] sm:$0x1] %vm908_vm7, %v907_v17 }
 0x524   :  { %1136 = shalt.err (!%p1133_p4)
}
 0x525   :  { %s1137_s28 = scalar_lea.hbm %s1373_s12, 16 }
 0x526   :  { %p1138_p5 = scmp.ne.s32.totalorder %s1373_s12, %s1137_s28  ;;  %p1141_p6 = scmp.lt.u32.totalorder %s1137_s28, %s1373_s12 }
 0x528   :  { %p1143_p7 = pnand %p1141_p6, %p1138_p5 }
 0x52a   :  { %1146 = shalt.err (!%p1143_p7)
}
 0x52b   :  { %919 = dma.vmem_to_hbm [thread:$0]  %s917_s10, 16, %s1373_s12, [#allocation4]  }
 0x52c   :  { %1147 = dma.done.wait [#allocation4], 16  }
 0x52d   :  { %1148 = vsyncadd [#allocation4], 4294967280 }
 0x52e   :  { %923 = vsyncpa [#allocation4], 1 }

</bundles_post_ra>
